<compile_context>
chip_gen: v6e
topology: v6e:2x2x1
jax: 0.10.0
libtpu: 0.0.40
codegen_flags: <defaults>
</compile_context>

<pallas_src>
import functools

import numpy as np
import jax
import jax.numpy as jnp
from jax import lax
from jax.experimental import pallas as pl
from jax.experimental.pallas import tpu as pltpu

INV_SQRT2 = float(1.0 / np.sqrt(2.0))


def _eb_kernel(z_ref, a_ref, out_ref, *, n_rows, n_cols, tile_l, mask):
    """One (R_pad, tile_l) tile of the flattened latent.

    z_ref  : (R_pad, tile_l) f32 latent tile
    a_ref  : (R_pad, 1)      f32 per-row scale = inv_std / sqrt(2)
    out_ref: (1, 1, 1)       f32 partial sum for this grid step
    """
    a = a_ref[...]                       # (R_pad, 1), broadcasts over lanes
    b = a * jnp.float32(0.5)             # half bin-width in scaled units
    z = z_ref[...]                       # (R_pad, tile_l)

    t = a * z
    # p_tilde = 0.5*erf(a*(z+0.5)) - 0.5*erf(a*(z-0.5)) = 0.5*(erf(t+b)-erf(t-b))
    p = jnp.float32(0.5) * (lax.erf(t + b) - lax.erf(t - b))
    # NOTE: like the PyTorch reference, no epsilon clamp before log.
    logp = jnp.log(p)

    if mask:
        rows = lax.broadcasted_iota(jnp.int32, z.shape, 0)
        cols = lax.broadcasted_iota(jnp.int32, z.shape, 1) + pl.program_id(0) * tile_l
        valid = (rows < n_rows) & (cols < n_cols)
        logp = jnp.where(valid, logp, jnp.float32(0.0))

    out_ref[...] = jnp.broadcast_to(-jnp.sum(logp), out_ref.shape)


def entropy_bottleneck_forward(z, prior_log_variance, *, tile_l=None,
                               target_block_bytes=2 * 1024 * 1024):
    """JAX wrapper reproducing EntropyBottleneck.forward(z).

    z                  : (N, C, H, W) float32
    prior_log_variance : (1, C, 1, 1) float32
    returns            : scalar float32
    """
    N, C, H, W = z.shape
    R = N * C          # rows: (n, c) pairs, contiguous in NCHW
    L = H * W          # lanes: spatial, contiguous in NCHW

    # Sublane dim must be a multiple of 8 (full vreg fill).
    R_pad = -(-R // 8) * 8

    # Lane tile: multiple of 128, adaptively sized toward target_block_bytes.
    if tile_l is None:
        max_cols = max(128, (target_block_bytes // (R_pad * 4)) // 128 * 128)
        l_ceil = -(-L // 128) * 128
        tile_l = int(min(max_cols, l_ceil))
    assert tile_l % 128 == 0, "tile_l must be a multiple of 128"
    L_pad = -(-L // tile_l) * tile_l
    grid = (L_pad // tile_l,)

    # Contiguous reshape (no transpose, no extra HBM pass).
    z2 = jnp.reshape(z, (R, L)).astype(jnp.float32)

    # Per-row scale a = inv_std / sqrt(2), folded once on a tiny (R,) vector.
    a_chan = (jnp.exp(-0.5 * prior_log_variance).reshape(C) *
              jnp.float32(INV_SQRT2)).astype(jnp.float32)
    a_row = jnp.tile(a_chan, N)                      # row r = n*C + c

    mask = (R_pad != R) or (L_pad != L)
    if mask:
        z2 = jnp.pad(z2, ((0, R_pad - R), (0, L_pad - L)))
    if R_pad != R:
        a_row = jnp.pad(a_row, (0, R_pad - R), constant_values=1.0)
    a_row = a_row.reshape(R_pad, 1)

    kernel = functools.partial(_eb_kernel, n_rows=R, n_cols=L,
                               tile_l=tile_l, mask=mask)

    partials = pl.pallas_call(
        kernel,
        out_shape=jax.ShapeDtypeStruct((grid[0], 1, 1), jnp.float32),
        grid_spec=pltpu.PrefetchScalarGridSpec(
            num_scalar_prefetch=0,
            grid=grid,
            in_specs=[
                pl.BlockSpec((R_pad, tile_l), lambda j: (0, j)),
                pl.BlockSpec((R_pad, 1), lambda j: (0, 0)),
            ],
            out_specs=pl.BlockSpec((1, 1, 1), lambda j: (j, 0, 0)),
        ),
        compiler_params=pltpu.CompilerParams(
            # Independent per-tile partials -> parallel (both TCs on v7x).
            dimension_semantics=("parallel",),
            # Comfortable on v5e/v6e (128 MiB) and v7x (64 MiB) VMEM.
            vmem_limit_bytes=32 * 1024 * 1024,
        ),
    )(z2, a_row)

    return jnp.sum(partials)


def entropy_bottleneck_reference(z, prior_log_variance):
    """Pure-JAX reference of the PyTorch forward for validation."""
    inv_std = jnp.exp(-0.5 * prior_log_variance)  # (1, C, 1, 1) broadcasts over NCHW

    def antideriv(x):
        return 0.5 * lax.erf(INV_SQRT2 * inv_std * x)

    p_tilde = antideriv(z + 0.5) - antideriv(z - 0.5)
    return -jnp.sum(jnp.log(p_tilde))


def _check(z, plv, **kwargs):
    out = jax.block_until_ready(entropy_bottleneck_forward(z, plv, **kwargs))
    ref = jax.block_until_ready(entropy_bottleneck_reference(z, plv))
    assert jnp.allclose(out, ref, rtol=1e-5, atol=1e-4), (out, ref)


if __name__ == "__main__":
    key = jax.random.PRNGKey(0)
    k0, k1, k2, k3 = jax.random.split(key, 4)

    # Main case: batch=2, z_channels=4, spatial=16 (module defaults).
    N, C, H, W = 2, 4, 16, 16
    z = jax.random.normal(k0, (N, C, H, W), dtype=jnp.float32)
    plv = jnp.ones((1, C, 1, 1), dtype=jnp.float32)  # matches nn.Parameter init
    _check(z, plv)

    # Extra check: row + lane padding, multiple grid steps (forced small tile).
    z_b = jax.random.normal(k1, (1, 4, 16, 20), dtype=jnp.float32)
    plv_b = jnp.ones((1, 4, 1, 1), jnp.float32) + 0.1 * jax.random.normal(
        k2, (1, 4, 1, 1), dtype=jnp.float32)
    _check(z_b, plv_b, tile_l=128)

    # Extra check: odd channel count / spatial size on the auto-tiling path.
    z_c = jax.random.normal(k3, (2, 3, 5, 9), dtype=jnp.float32)
    plv_c = jnp.ones((1, 3, 1, 1), dtype=jnp.float32)
    _check(z_c, plv_c)

    print("KERNEL_OK")
</pallas_src>

<mosaic_0001>
module attributes {stable_mosaic.version = 11 : i64} {
  func.func @_eb_kernel(%arg0: i32, %arg1: memref<8x256xf32, #tpu.memory_space<vmem>>, %arg2: memref<8x1xf32, #tpu.memory_space<vmem>>, %arg3: memref<1x1x1xf32, #tpu.memory_space<vmem>>) attributes {dimension_semantics = [#tpu.dimension_semantics<parallel>], iteration_bounds = array<i64: 1>, scalar_prefetch = 0 : i64, scratch_operands = 0 : i64, tpu.core_type = #tpu.core_type<tc>, window_params = [{transform_indices = @transform_0, window_bounds = array<i64: 8, 256>}, {pipeline_mode = #tpu.pipeline_mode<synchronous>, transform_indices = @transform_1, window_bounds = array<i64: 8, 1>}, {transform_indices = @transform_2, window_bounds = array<i64: 1, 1, 1>}]} {
    %c0 = arith.constant 0 : index
    %c0_0 = arith.constant 0 : index
    %0 = vector.load %arg2[%c0, %c0_0] : memref<8x1xf32, #tpu.memory_space<vmem>>, vector<8x1xf32>
    %cst = arith.constant 5.000000e-01 : f32
    %1 = vector.broadcast %cst : f32 to vector<8x1xf32>
    %2 = arith.mulf %0, %1 : vector<8x1xf32>
    %c0_1 = arith.constant 0 : index
    %c0_2 = arith.constant 0 : index
    %3 = vector.load %arg1[%c0_1, %c0_2] : memref<8x256xf32, #tpu.memory_space<vmem>>, vector<8x256xf32>
    %4 = vector.broadcast %0 : vector<8x1xf32> to vector<8x256xf32>
    %5 = arith.mulf %4, %3 : vector<8x256xf32>
    %6 = vector.broadcast %2 : vector<8x1xf32> to vector<8x256xf32>
    %7 = arith.addf %5, %6 : vector<8x256xf32>
    %8 = math.erf %7 : vector<8x256xf32>
    %9 = vector.broadcast %2 : vector<8x1xf32> to vector<8x256xf32>
    %10 = arith.subf %5, %9 : vector<8x256xf32>
    %11 = math.erf %10 : vector<8x256xf32>
    %12 = arith.subf %8, %11 : vector<8x256xf32>
    %cst_3 = arith.constant 5.000000e-01 : f32
    %13 = vector.broadcast %cst_3 : f32 to vector<8x256xf32>
    %14 = arith.mulf %13, %12 : vector<8x256xf32>
    %15 = math.log %14 : vector<8x256xf32>
    %16 = vector.shape_cast %15 : vector<8x256xf32> to vector<1x8x256xf32>
    %cst_4 = arith.constant dense<0.000000e+00> : vector<1xf32>
    %17 = vector.multi_reduction <add>, %16, %cst_4 [1, 2] : vector<1x8x256xf32> to vector<1xf32>
    %18 = vector.shape_cast %17 : vector<1xf32> to vector<1x1x1xf32>
    %19 = vector.extract %18[0, 0, 0] : f32 from vector<1x1x1xf32>
    %cst_5 = arith.constant 0.000000e+00 : f32
    %20 = arith.subf %cst_5, %19 : f32
    %21 = vector.broadcast %20 : f32 to vector<1x1x1xf32>
    %c0_6 = arith.constant 0 : index
    %c0_7 = arith.constant 0 : index
    %c0_8 = arith.constant 0 : index
    %22 = vector.load %arg3[%c0_6, %c0_7, %c0_8] : memref<1x1x1xf32, #tpu.memory_space<vmem>>, vector<1x1x1xf32>
    tpu.vector_store %arg3[%c0_6, %c0_7, %c0_8], %21 {strides = array<i32>} : memref<1x1x1xf32, #tpu.memory_space<vmem>>, vector<1x1x1xf32>,
    return
  }
  func.func @transform_0(%arg0: i32) -> (i32, i32) {
    %c0_i32 = arith.constant 0 : i32
    %c0_i32_0 = arith.constant 0 : i32
    return %c0_i32, %arg0 : i32, i32
  }
  func.func @transform_1(%arg0: i32) -> (i32, i32) {
    %c0_i32 = arith.constant 0 : i32
    %c0_i32_0 = arith.constant 0 : i32
    %c0_i32_1 = arith.constant 0 : i32
    return %c0_i32, %c0_i32_0 : i32, i32
  }
  func.func @transform_2(%arg0: i32) -> (i32, i32, i32) {
    %c0_i32 = arith.constant 0 : i32
    %c0_i32_0 = arith.constant 0 : i32
    %c0_i32_1 = arith.constant 0 : i32
    return %arg0, %c0_i32, %c0_i32_0 : i32, i32, i32
  }
}

</mosaic_0001>

<bundles_post_ra>
// kernel: tpu_custom_call.1
= control target key start
LH: loop header
LB: loop body
LE: loop exit
PB: predicated region body
PF: predicated region fallthrough
CT: control target
= control target key end

     0   :  { %7 = vsyncpa [#allocation3], 0  ;;  %s174_s0 = inlined_call_operand.hbm [shape: f32[8,256], index: 0, kind: input, shape index: {}]   ;;  %s175_s1 = inlined_call_operand.vmem [shape: f32[8,1], index: 1, kind: input, shape index: {}]   ;;  %s176_s2 = inlined_call_operand.hbm [shape: f32[1,1,1], index: 2, kind: output, shape index: {}]  }
   0x1   :  { %8 = vsyncpa [#allocation4], 0  ;;  %s147_s9 = smov [#allocation2]  }
   0x2   :  { %s15_s10 = sshll.u32 %s147_s9, 4  ;;  %s16_s10 = int_to_ptr.vmem [resolvable:$true] %s15_s10 }
   0x3   :  { %s111_s11 = scalar_lea.vmem %s16_s10, 256  ;;  %p116_p1 = scmp.lt.s32.totalorder %s16_s10, %s16_s10 }
   0x4   :  { %p112_p0 = scmp.ne.s32.totalorder %s16_s10, %s111_s11  ;;  %p117_p2 = scmp.lt.s32.totalorder %s111_s11, %s111_s11 }
   0x6   :  { %p118_p3 = por %p117_p2, %p116_p1 }
   0x8   :  { %p119_p4 = pnand %p118_p3, %p112_p0 }
   0xa   :  { %122 = shalt.err (!%p119_p4)
}
   0xb   :  { %18 = dma.hbm_to_vmem [thread:$0]  %s174_s0, 256, %s16_s10, [#allocation3]  }
   0xc   :  { %143 = dma.done.wait [#allocation3], 256  }
   0xd   :  { %144 = vsyncadd [#allocation3], 4294967040  ;;  %v148_v0 = vmov 0   ;;  %v24_v1 = vld [vmem:[%s175_s1] sm:$0xff]  ;;  %v27_v4 = vld [vmem:[#allocation2 + $0x8] sm:$0xff]  ;;  %s149_s0 = smov [#allocation5]  }
   0xe   :  { %90 = vset.pattern.permute.xlu0 %v148_v0  ;;  %v25_v2 = vmul.f32 0.5, %v24_v1  ;;  %v26_v3 = vld [vmem:[#allocation2] sm:$0xff]  ;;  %s76_s1 = sshll.u32 %s149_s0, 4  ;;  %vm68_vm0 = vcmask 0   ;;  %s77_s1 = int_to_ptr.vmem [resolvable:$true] %s76_s1 }
   0xf   :  { %30 = vperm.xlu0 %90, %v24_v1   ;;  %s123_s18 = scalar_lea.vmem %s77_s1, 16  ;;  %s127_s19 = scalar_lea.vmem %s77_s1, 32 }
  0x10   :  { %p124_p5 = scmp.ne.s32.totalorder %s77_s1, %s123_s18  ;;  %p128_p6 = scmp.lt.s32.totalorder %s77_s1, %s77_s1 }
  0x11   :  { %p129_p7 = scmp.lt.s32.totalorder %s127_s19, %s123_s18 }
  0x13   :  { %37 = vperm.xlu0 %90, %v25_v2   ;;  %p130_p8 = por %p129_p7, %p128_p6 }
  0x15   :  { %p131_p9 = pnand %p130_p8, %p124_p5 }
  0x8a   :  { %v31_v5 = vpop.permute.xlu0 %30 }
  0x8b   :  { %v33_v6 = vmul.f32 %v31_v5, %v26_v3  ;;  %v34_v7 = vmul.f32 %v31_v5, %v27_v4 }
  0x8e   :  { %v38_v8 = vpop.permute.xlu0 %37 }
  0x8f   :  { %v40_v9 = vadd.f32 %v38_v8, %v33_v6  ;;  %v41_v10 = vadd.f32 %v38_v8, %v34_v7  ;;  %v44_v11 = vsub.f32 %v33_v6, %v38_v8  ;;  %v45_v12 = vsub.f32 %v34_v7, %v38_v8 }
  0x91   :  { %91 = verf.f32 %v40_v9 }
  0x92   :  { %93 = verf.f32 %v41_v10 }
  0x93   :  { %95 = verf.f32 %v44_v11 }
  0x94   :  { %97 = verf.f32 %v45_v12 }
  0x9e   :  { %v92_v13 = vpop.eup %91 }
  0x9f   :  { %v94_v14 = vpop.eup %93 }
  0xa0   :  { %v96_v15 = vpop.eup %95 }
  0xa1   :  { %v98_v16 = vpop.eup %97  ;;  %v48_v17 = vsub.f32 %v92_v13, %v96_v15 }
  0xa2   :  { %v49_v18 = vsub.f32 %v94_v14, %v98_v16 }
  0xa3   :  { %v50_v19 = vmul.f32 0.5, %v48_v17 }
  0xa4   :  { %v51_v20 = vmul.f32 0.5, %v49_v18 }
  0xa5   :  { %99 = vlog2.f32 %v50_v19 }
  0xa6   :  { %101 = vlog2.f32 %v51_v20 }
  0xb2   :  { %v100_v21 = vpop.eup %99 }
  0xb3   :  { %v102_v22 = vpop.eup %101  ;;  %v53_v23 = vmul.f32 0.6931472, %v100_v21 }
  0xb4   :  { %v55_v24 = vmul.f32 0.6931472, %v102_v22 }
  0xb6   :  { %v56_v25 = vadd.f32 %v55_v24, %v53_v23 }
  0xb8   :  { %57 = vadd.xlane.f32.xlu1 %v56_v25 }
 0x141   :  { %v58_v26 = vpop.xlane.xlu1 %57 }
 0x142   :  { %v59_v27 = vrot.slane %v58_v26, 4 }
 0x144   :  { %v60_v28 = vadd.f32 %v59_v27, %v58_v26 }
 0x146   :  { %v61_v29 = vrot.slane %v60_v28, 2 }
 0x148   :  { %v62_v30 = vadd.f32 %v61_v29, %v60_v28 }
 0x14a   :  { %v63_v31 = vrot.slane %v62_v30, 1 }
 0x14c   :  { %v64_v32 = vadd.f32 %v63_v31, %v62_v30 }
 0x14e   :  { %85 = vpush %v64_v32 }
 0x17f   :  { %s86_s16 = spop %85 }
 0x180   :  { %s66_s17 = ssub.f32 0.0, %s86_s16 }
 0x182   :  { %v67_v33 = vstv %s66_s17 }
 0x183   :  { %69 = vst.msk [vmem:[#allocation5] sm:$0x1] %vm68_vm0, %v67_v33 }
 0x184   :  { %134 = shalt.err (!%p131_p9)
}
 0x185   :  { %79 = dma.vmem_to_hbm [thread:$0]  %s77_s1, 16, %s176_s2, [#allocation4]  }
 0x186   :  { %145 = dma.done.wait [#allocation4], 16  }
 0x187   :  { %146 = vsyncadd [#allocation4], 4294967280 }
 0x188   :  { %83 = vsyncpa [#allocation3], 1 }
 0x189   :  { %84 = vsyncpa [#allocation4], 1 }

</bundles_post_ra>
